<compile_context>
chip_gen: v7x
topology: tpu7x:2x2x1
jax: 0.10.0
libtpu: 0.0.40
codegen_flags: <defaults>
</compile_context>

<pallas_src>
import jax
import jax.numpy as jnp
from jax import lax
from jax.experimental import pallas as pl
from jax.experimental.pallas import tpu as pltpu

# ---------------- config (mirrors ModelConfig) ----------------
HIDDEN_SIZE = 32
NUM_HEADS = 4
NUM_KV_HEADS = 2
HEAD_DIM = HIDDEN_SIZE // NUM_HEADS            # 8
NUM_KV_GROUPS = NUM_HEADS // NUM_KV_HEADS      # 2
ROPE_THETA = 10000.0
BATCH = 2
SEQ = 8

QD = NUM_HEADS * HEAD_DIM                      # 32  (query width)
KD = NUM_KV_HEADS * HEAD_DIM                   # 16  (kv width)
QKV_OUT = QD + KD + KD + QD + KD               # 112: [q_raw | k_raw | v | q_rot | k_rot]


# ---------------- fused Pallas kernel ----------------
def _fused_attention_kernel(x_ref, wqkv_ref, bqkv_ref,
                            cos_q_ref, sin_q_ref, cos_k_ref, sin_k_ref,
                            mask_ref, wo_ref, bo_ref, o_ref):
    x = x_ref[...]                                                   # (S, H) f32

    # Single fused projection: columns = [q_raw | k_raw | v | q_rot | k_rot].
    qkv = jnp.dot(x, wqkv_ref[...],
                  preferred_element_type=jnp.float32) + bqkv_ref[...]  # (S, 112)

    # RoPE as pure VPU multiply-adds (rotation already folded into the q_rot/k_rot
    # weight columns on the host; score scale folded into cos_q/sin_q).
    q = (qkv[:, :QD] * cos_q_ref[...]
         + qkv[:, QD + 2 * KD:2 * QD + 2 * KD] * sin_q_ref[...])      # (S, 32), pre-scaled
    k = (qkv[:, QD:QD + KD] * cos_k_ref[...]
         + qkv[:, 2 * QD + 2 * KD:] * sin_k_ref[...])                 # (S, 16)
    v = qkv[:, QD + KD:QD + 2 * KD]                                   # (S, 16)

    mask = mask_ref[...]                                              # (S, S) additive causal
    wo = wo_ref[...]                                                  # (H, H)

    acc = jnp.zeros((x.shape[0], HIDDEN_SIZE), jnp.float32)           # (S, H) o_proj accumulator
    for h in range(NUM_HEADS):                                        # static, unrolled
        g = h // NUM_KV_GROUPS                                        # GQA: repeat_interleave
        qh = q[:, h * HEAD_DIM:(h + 1) * HEAD_DIM]                    # (S, D)
        kh = k[:, g * HEAD_DIM:(g + 1) * HEAD_DIM]                    # (S, D)
        vh = v[:, g * HEAD_DIM:(g + 1) * HEAD_DIM]                    # (S, D)

        # scores = q @ k^T (scale already folded into q); no explicit transpose.
        s = lax.dot_general(qh, kh, (((1,), (1,)), ((), ())),
                            preferred_element_type=jnp.float32) + mask
        m = jnp.max(s, axis=-1, keepdims=True)
        p = jnp.exp(s - m)
        p = p * pl.reciprocal(jnp.sum(p, axis=-1, keepdims=True), approx=True)
        oh = jnp.dot(p, vh, preferred_element_type=jnp.float32)       # (S, D)

        # Fused o_proj: accumulate this head's contribution (sublane-aligned wo slice).
        acc = acc + jnp.dot(oh, wo[h * HEAD_DIM:(h + 1) * HEAD_DIM, :],
                            preferred_element_type=jnp.float32)

    o_ref[...] = (acc + bo_ref[...]).astype(o_ref.dtype)


def attention_forward(x, fused):
    """x: [B, S, H] -> [B, S, H], one fused pallas_call over grid=(B,)."""
    B, S, H = x.shape
    return pl.pallas_call(
        _fused_attention_kernel,
        out_shape=jax.ShapeDtypeStruct((B, S, H), x.dtype),
        grid=(B,),
        in_specs=[
            pl.BlockSpec((None, S, H), lambda b: (b, 0, 0)),          # x (per-batch slab)
            pl.BlockSpec((H, QKV_OUT), lambda b: (0, 0)),             # fused qkv(+rot) weight
            pl.BlockSpec((1, QKV_OUT), lambda b: (0, 0)),             # fused qkv(+rot) bias
            pl.BlockSpec((S, QD), lambda b: (0, 0)),                  # cos_q (scaled)
            pl.BlockSpec((S, QD), lambda b: (0, 0)),                  # sin_q (scaled)
            pl.BlockSpec((S, KD), lambda b: (0, 0)),                  # cos_k
            pl.BlockSpec((S, KD), lambda b: (0, 0)),                  # sin_k
            pl.BlockSpec((S, S), lambda b: (0, 0)),                   # additive causal mask
            pl.BlockSpec((H, H), lambda b: (0, 0)),                   # o_proj weight
            pl.BlockSpec((1, H), lambda b: (0, 0)),                   # o_proj bias
        ],
        out_specs=pl.BlockSpec((None, S, H), lambda b: (b, 0, 0)),
        compiler_params=pltpu.CompilerParams(
            dimension_semantics=("parallel",)),                       # v7x: shard B over 2 TCs
    )(x, fused["wqkv_t"], fused["bqkv"],
      fused["cos_q"], fused["sin_q"], fused["cos_k"], fused["sin_k"],
      fused["mask"], fused["wo_t"], fused["bo"])


# ---------------- host-side precompute (one time) ----------------
def rope_tables(seq_len, dim, theta):
    inv_freq = 1.0 / (theta ** (jnp.arange(0, dim, 2, dtype=jnp.float32) / dim))
    t = jnp.arange(seq_len, dtype=jnp.float32)          # default position_ids
    freqs = jnp.outer(t, inv_freq)                       # (S, D/2)
    emb = jnp.concatenate([freqs, freqs], axis=-1)       # (S, D)
    return jnp.cos(emb), jnp.sin(emb)


def _rotate_half_matrix(dim):
    """R such that x @ R == rotate_half(x) == concat(-x[half:], x[:half])."""
    half = dim // 2
    eye = jnp.eye(half, dtype=jnp.float32)
    z = jnp.zeros((half, half), jnp.float32)
    return jnp.block([[z, eye], [-eye, z]])


def prepare_fused_params(params, seq_len):
    """Fold qkv weights, RoPE rotation, score scale, and causal mask on the host."""
    scale = 1.0 / (HEAD_DIM ** 0.5)
    r = _rotate_half_matrix(HEAD_DIM)
    rq = jnp.kron(jnp.eye(NUM_HEADS, dtype=jnp.float32), r)       # (QD, QD) block-diag
    rk = jnp.kron(jnp.eye(NUM_KV_HEADS, dtype=jnp.float32), r)    # (KD, KD) block-diag

    wqkv = jnp.concatenate(
        [params["wq_t"], params["wk_t"], params["wv_t"],
         params["wq_t"] @ rq, params["wk_t"] @ rk], axis=1)        # (H, 112)
    bqkv = jnp.concatenate(
        [params["bq"], params["bk"], params["bv"],
         params["bq"] @ rq, params["bk"] @ rk])                    # (112,)

    cos, sin = rope_tables(seq_len, HEAD_DIM, ROPE_THETA)          # (S, D)
    cos_q = jnp.tile(cos, (1, NUM_HEADS)) * scale                  # scale folded into q tables
    sin_q = jnp.tile(sin, (1, NUM_HEADS)) * scale
    cos_k = jnp.tile(cos, (1, NUM_KV_HEADS))
    sin_k = jnp.tile(sin, (1, NUM_KV_HEADS))

    qi = jnp.arange(seq_len)[:, None]
    ki = jnp.arange(seq_len)[None, :]
    mask = jnp.where(qi >= ki, 0.0, -1e30).astype(jnp.float32)     # additive causal mask

    return {
        "wqkv_t": wqkv, "bqkv": bqkv.reshape(1, QKV_OUT),
        "cos_q": cos_q, "sin_q": sin_q, "cos_k": cos_k, "sin_k": sin_k,
        "mask": mask,
        "wo_t": params["wo_t"], "bo": params["bo"].reshape(1, HIDDEN_SIZE),
    }


# ---------------- pure-JAX reference ----------------
def _rotate_half(x):
    half = x.shape[-1] // 2
    return jnp.concatenate([-x[..., half:], x[..., :half]], axis=-1)


def ref_forward(x, params):
    B, S, H = x.shape
    hp = lax.Precision.HIGHEST
    mm = lambda a, b: jnp.dot(a, b, precision=hp)

    q = (mm(x.reshape(B * S, H), params["wq_t"]) + params["bq"]).reshape(B, S, NUM_HEADS, HEAD_DIM)
    k = (mm(x.reshape(B * S, H), params["wk_t"]) + params["bk"]).reshape(B, S, NUM_KV_HEADS, HEAD_DIM)
    v = (mm(x.reshape(B * S, H), params["wv_t"]) + params["bv"]).reshape(B, S, NUM_KV_HEADS, HEAD_DIM)

    cos, sin = rope_tables(S, HEAD_DIM, ROPE_THETA)
    cos_ = cos[None, :, None, :]
    sin_ = sin[None, :, None, :]
    q = q * cos_ + _rotate_half(q) * sin_
    k = k * cos_ + _rotate_half(k) * sin_

    q = q.transpose(0, 2, 1, 3)                                    # [B, Hq, S, D]
    k = jnp.repeat(k.transpose(0, 2, 1, 3), NUM_KV_GROUPS, axis=1)
    v = jnp.repeat(v.transpose(0, 2, 1, 3), NUM_KV_GROUPS, axis=1)

    scores = jnp.einsum("bhqd,bhkd->bhqk", q, k, precision=hp) / (HEAD_DIM ** 0.5)
    causal = jnp.tril(jnp.ones((S, S), dtype=bool))
    scores = jnp.where(causal[None, None], scores, -1e30)
    probs = jax.nn.softmax(scores, axis=-1)
    attn = jnp.einsum("bhqk,bhkd->bhqd", probs, v, precision=hp)

    attn = attn.transpose(0, 2, 1, 3).reshape(B * S, H)
    return (mm(attn, params["wo_t"]) + params["bo"]).reshape(B, S, H)


# ---------------- params ----------------
def init_params(key):
    ks = jax.random.split(key, 8)
    sc = 0.05

    def w(k, shape):
        return sc * jax.random.normal(k, shape, jnp.float32)

    wq = w(ks[0], (NUM_HEADS * HEAD_DIM, HIDDEN_SIZE))             # PyTorch [out, in]
    wk = w(ks[1], (NUM_KV_HEADS * HEAD_DIM, HIDDEN_SIZE))
    wv = w(ks[2], (NUM_KV_HEADS * HEAD_DIM, HIDDEN_SIZE))
    wo = w(ks[3], (HIDDEN_SIZE, HIDDEN_SIZE))
    return {
        "wq_t": wq.T, "bq": w(ks[4], (NUM_HEADS * HEAD_DIM,)),
        "wk_t": wk.T, "bk": w(ks[5], (NUM_KV_HEADS * HEAD_DIM,)),
        "wv_t": wv.T, "bv": w(ks[6], (NUM_KV_HEADS * HEAD_DIM,)),
        "wo_t": wo.T, "bo": w(ks[7], (HIDDEN_SIZE,)),
    }


if __name__ == "__main__":
    key = jax.random.PRNGKey(0)
    pkey, xkey = jax.random.split(key)
    params = init_params(pkey)
    x = jax.random.normal(xkey, (BATCH, SEQ, HIDDEN_SIZE), jnp.float32)

    fused = prepare_fused_params(params, SEQ)   # one-time host-side weight/table folding
    out = attention_forward(x, fused)
    out = jax.block_until_ready(out)
    assert out.shape == (BATCH, SEQ, HIDDEN_SIZE)

    ref = ref_forward(x, params)
    err = float(jnp.max(jnp.abs(out - ref)))
    # 2e-3 tolerance: softmax denominator uses the EUP approximate reciprocal.
    if err > 2e-3:
        raise AssertionError(f"mismatch vs reference: max abs err = {err}")
    print("KERNEL_OK")
</pallas_src>

<mosaic_0001>
module attributes {stable_mosaic.version = 11 : i64} {
  func.func @_fused_attention_kernel(%arg0: i32, %arg1: memref<1x8x32xf32, #tpu.memory_space<vmem>>, %arg2: memref<32x112xf32, #tpu.memory_space<vmem>>, %arg3: memref<1x112xf32, #tpu.memory_space<vmem>>, %arg4: memref<8x32xf32, #tpu.memory_space<vmem>>, %arg5: memref<8x32xf32, #tpu.memory_space<vmem>>, %arg6: memref<8x16xf32, #tpu.memory_space<vmem>>, %arg7: memref<8x16xf32, #tpu.memory_space<vmem>>, %arg8: memref<8x8xf32, #tpu.memory_space<vmem>>, %arg9: memref<32x32xf32, #tpu.memory_space<vmem>>, %arg10: memref<1x32xf32, #tpu.memory_space<vmem>>, %arg11: memref<1x8x32xf32, #tpu.memory_space<vmem>>) attributes {dimension_semantics = [#tpu.dimension_semantics<parallel>], iteration_bounds = array<i64: 2>, scalar_prefetch = 0 : i64, scratch_operands = 0 : i64, tpu.core_type = #tpu.core_type<tc>, window_params = [{transform_indices = @transform_0, window_bounds = array<i64: 1, 8, 32>}, {pipeline_mode = #tpu.pipeline_mode<synchronous>, transform_indices = @transform_1, window_bounds = array<i64: 32, 112>}, {pipeline_mode = #tpu.pipeline_mode<synchronous>, transform_indices = @transform_2, window_bounds = array<i64: 1, 112>}, {pipeline_mode = #tpu.pipeline_mode<synchronous>, transform_indices = @transform_3, window_bounds = array<i64: 8, 32>}, {pipeline_mode = #tpu.pipeline_mode<synchronous>, transform_indices = @transform_4, window_bounds = array<i64: 8, 32>}, {pipeline_mode = #tpu.pipeline_mode<synchronous>, transform_indices = @transform_5, window_bounds = array<i64: 8, 16>}, {pipeline_mode = #tpu.pipeline_mode<synchronous>, transform_indices = @transform_6, window_bounds = array<i64: 8, 16>}, {pipeline_mode = #tpu.pipeline_mode<synchronous>, transform_indices = @transform_7, window_bounds = array<i64: 8, 8>}, {pipeline_mode = #tpu.pipeline_mode<synchronous>, transform_indices = @transform_8, window_bounds = array<i64: 32, 32>}, {pipeline_mode = #tpu.pipeline_mode<synchronous>, transform_indices = @transform_9, window_bounds = array<i64: 1, 32>}, {transform_indices = @transform_10, window_bounds = array<i64: 1, 8, 32>}]} {
    %c0 = arith.constant 0 : index
    %c0_0 = arith.constant 0 : index
    %c0_1 = arith.constant 0 : index
    %0 = vector.load %arg1[%c0, %c0_0, %c0_1] : memref<1x8x32xf32, #tpu.memory_space<vmem>>, vector<1x8x32xf32>
    %1 = vector.shape_cast %0 : vector<1x8x32xf32> to vector<8x32xf32>
    %c0_2 = arith.constant 0 : index
    %c0_3 = arith.constant 0 : index
    %2 = vector.load %arg2[%c0_2, %c0_3] : memref<32x112xf32, #tpu.memory_space<vmem>>, vector<32x112xf32>
    %cst = arith.constant dense<0.000000e+00> : vector<8x112xf32>
    %3 = tpu.matmul %1, %2, %cst {dimension_numbers = #tpu.dot_dimension_numbers<[1], [0], [0], [1], [0, 0, 1, 1], [], []>} : vector<8x32xf32>, vector<32x112xf32>, vector<8x112xf32> -> vector<8x112xf32>
    %c0_4 = arith.constant 0 : index
    %c0_5 = arith.constant 0 : index
    %4 = vector.load %arg3[%c0_4, %c0_5] : memref<1x112xf32, #tpu.memory_space<vmem>>, vector<1x112xf32>
    %5 = vector.broadcast %4 : vector<1x112xf32> to vector<8x112xf32>
    %6 = arith.addf %3, %5 : vector<8x112xf32>
    %7 = vector.extract_strided_slice %6 {offsets = [0, 0], sizes = [8, 32], strides = [1, 1]} : vector<8x112xf32> to vector<8x32xf32>
    %c0_6 = arith.constant 0 : index
    %c0_7 = arith.constant 0 : index
    %8 = vector.load %arg4[%c0_6, %c0_7] : memref<8x32xf32, #tpu.memory_space<vmem>>, vector<8x32xf32>
    %9 = arith.mulf %7, %8 : vector<8x32xf32>
    %10 = vector.extract_strided_slice %6 {offsets = [0, 64], sizes = [8, 32], strides = [1, 1]} : vector<8x112xf32> to vector<8x32xf32>
    %c0_8 = arith.constant 0 : index
    %c0_9 = arith.constant 0 : index
    %11 = vector.load %arg5[%c0_8, %c0_9] : memref<8x32xf32, #tpu.memory_space<vmem>>, vector<8x32xf32>
    %12 = arith.mulf %10, %11 : vector<8x32xf32>
    %13 = arith.addf %9, %12 : vector<8x32xf32>
    %14 = vector.extract_strided_slice %6 {offsets = [0, 32], sizes = [8, 16], strides = [1, 1]} : vector<8x112xf32> to vector<8x16xf32>
    %c0_10 = arith.constant 0 : index
    %c0_11 = arith.constant 0 : index
    %15 = vector.load %arg6[%c0_10, %c0_11] : memref<8x16xf32, #tpu.memory_space<vmem>>, vector<8x16xf32>
    %16 = arith.mulf %14, %15 : vector<8x16xf32>
    %17 = vector.extract_strided_slice %6 {offsets = [0, 96], sizes = [8, 16], strides = [1, 1]} : vector<8x112xf32> to vector<8x16xf32>
    %c0_12 = arith.constant 0 : index
    %c0_13 = arith.constant 0 : index
    %18 = vector.load %arg7[%c0_12, %c0_13] : memref<8x16xf32, #tpu.memory_space<vmem>>, vector<8x16xf32>
    %19 = arith.mulf %17, %18 : vector<8x16xf32>
    %20 = arith.addf %16, %19 : vector<8x16xf32>
    %21 = vector.extract_strided_slice %6 {offsets = [0, 48], sizes = [8, 16], strides = [1, 1]} : vector<8x112xf32> to vector<8x16xf32>
    %c0_14 = arith.constant 0 : index
    %c0_15 = arith.constant 0 : index
    %22 = vector.load %arg8[%c0_14, %c0_15] : memref<8x8xf32, #tpu.memory_space<vmem>>, vector<8x8xf32>
    %c0_16 = arith.constant 0 : index
    %c0_17 = arith.constant 0 : index
    %23 = vector.load %arg9[%c0_16, %c0_17] : memref<32x32xf32, #tpu.memory_space<vmem>>, vector<32x32xf32>
    %cst_18 = arith.constant 0.000000e+00 : f32
    %24 = vector.broadcast %cst_18 : f32 to vector<8x32xf32>
    %25 = vector.extract_strided_slice %13 {offsets = [0, 0], sizes = [8, 8], strides = [1, 1]} : vector<8x32xf32> to vector<8x8xf32>
    %26 = vector.extract_strided_slice %20 {offsets = [0, 0], sizes = [8, 8], strides = [1, 1]} : vector<8x16xf32> to vector<8x8xf32>
    %27 = vector.extract_strided_slice %21 {offsets = [0, 0], sizes = [8, 8], strides = [1, 1]} : vector<8x16xf32> to vector<8x8xf32>
    %cst_19 = arith.constant dense<0.000000e+00> : vector<8x8xf32>
    %28 = tpu.matmul %25, %26, %cst_19 {dimension_numbers = #tpu.dot_dimension_numbers<[1], [1], [0], [0], [0, 0, 1, 0], [], []>} : vector<8x8xf32>, vector<8x8xf32>, vector<8x8xf32> -> vector<8x8xf32>
    %29 = arith.addf %28, %22 : vector<8x8xf32>
    %cst_20 = arith.constant dense<0xFF800000> : vector<8xf32>
    %30 = vector.multi_reduction <maximumf>, %29, %cst_20 [1] : vector<8x8xf32> to vector<8xf32>
    %31 = vector.shape_cast %30 : vector<8xf32> to vector<8x1xf32>
    %32 = vector.broadcast %31 : vector<8x1xf32> to vector<8x8xf32>
    %33 = arith.subf %29, %32 : vector<8x8xf32>
    %34 = math.exp %33 : vector<8x8xf32>
    %cst_21 = arith.constant dense<0.000000e+00> : vector<8xf32>
    %35 = vector.multi_reduction <add>, %34, %cst_21 [1] : vector<8x8xf32> to vector<8xf32>
    %36 = vector.shape_cast %35 : vector<8xf32> to vector<8x1xf32>
    %37 = tpu.reciprocal %36 {approx = true} : vector<8x1xf32> -> vector<8x1xf32>
    %38 = vector.broadcast %37 : vector<8x1xf32> to vector<8x8xf32>
    %39 = arith.mulf %34, %38 : vector<8x8xf32>
    %cst_22 = arith.constant dense<0.000000e+00> : vector<8x8xf32>
    %40 = tpu.matmul %39, %27, %cst_22 {dimension_numbers = #tpu.dot_dimension_numbers<[1], [0], [0], [1], [0, 0, 1, 1], [], []>} : vector<8x8xf32>, vector<8x8xf32>, vector<8x8xf32> -> vector<8x8xf32>
    %41 = vector.extract_strided_slice %23 {offsets = [0, 0], sizes = [8, 32], strides = [1, 1]} : vector<32x32xf32> to vector<8x32xf32>
    %cst_23 = arith.constant dense<0.000000e+00> : vector<8x32xf32>
    %42 = tpu.matmul %40, %41, %cst_23 {dimension_numbers = #tpu.dot_dimension_numbers<[1], [0], [0], [1], [0, 0, 1, 1], [], []>} : vector<8x8xf32>, vector<8x32xf32>, vector<8x32xf32> -> vector<8x32xf32>
    %43 = arith.addf %24, %42 : vector<8x32xf32>
    %44 = vector.extract_strided_slice %13 {offsets = [0, 8], sizes = [8, 8], strides = [1, 1]} : vector<8x32xf32> to vector<8x8xf32>
    %45 = vector.extract_strided_slice %20 {offsets = [0, 0], sizes = [8, 8], strides = [1, 1]} : vector<8x16xf32> to vector<8x8xf32>
    %46 = vector.extract_strided_slice %21 {offsets = [0, 0], sizes = [8, 8], strides = [1, 1]} : vector<8x16xf32> to vector<8x8xf32>
    %cst_24 = arith.constant dense<0.000000e+00> : vector<8x8xf32>
    %47 = tpu.matmul %44, %45, %cst_24 {dimension_numbers = #tpu.dot_dimension_numbers<[1], [1], [0], [0], [0, 0, 1, 0], [], []>} : vector<8x8xf32>, vector<8x8xf32>, vector<8x8xf32> -> vector<8x8xf32>
    %48 = arith.addf %47, %22 : vector<8x8xf32>
    %cst_25 = arith.constant dense<0xFF800000> : vector<8xf32>
    %49 = vector.multi_reduction <maximumf>, %48, %cst_25 [1] : vector<8x8xf32> to vector<8xf32>
    %50 = vector.shape_cast %49 : vector<8xf32> to vector<8x1xf32>
    %51 = vector.broadcast %50 : vector<8x1xf32> to vector<8x8xf32>
    %52 = arith.subf %48, %51 : vector<8x8xf32>
    %53 = math.exp %52 : vector<8x8xf32>
    %cst_26 = arith.constant dense<0.000000e+00> : vector<8xf32>
    %54 = vector.multi_reduction <add>, %53, %cst_26 [1] : vector<8x8xf32> to vector<8xf32>
    %55 = vector.shape_cast %54 : vector<8xf32> to vector<8x1xf32>
    %56 = tpu.reciprocal %55 {approx = true} : vector<8x1xf32> -> vector<8x1xf32>
    %57 = vector.broadcast %56 : vector<8x1xf32> to vector<8x8xf32>
    %58 = arith.mulf %53, %57 : vector<8x8xf32>
    %cst_27 = arith.constant dense<0.000000e+00> : vector<8x8xf32>
    %59 = tpu.matmul %58, %46, %cst_27 {dimension_numbers = #tpu.dot_dimension_numbers<[1], [0], [0], [1], [0, 0, 1, 1], [], []>} : vector<8x8xf32>, vector<8x8xf32>, vector<8x8xf32> -> vector<8x8xf32>
    %60 = vector.extract_strided_slice %23 {offsets = [8, 0], sizes = [8, 32], strides = [1, 1]} : vector<32x32xf32> to vector<8x32xf32>
    %cst_28 = arith.constant dense<0.000000e+00> : vector<8x32xf32>
    %61 = tpu.matmul %59, %60, %cst_28 {dimension_numbers = #tpu.dot_dimension_numbers<[1], [0], [0], [1], [0, 0, 1, 1], [], []>} : vector<8x8xf32>, vector<8x32xf32>, vector<8x32xf32> -> vector<8x32xf32>
    %62 = arith.addf %43, %61 : vector<8x32xf32>
    %63 = vector.extract_strided_slice %13 {offsets = [0, 16], sizes = [8, 8], strides = [1, 1]} : vector<8x32xf32> to vector<8x8xf32>
    %64 = vector.extract_strided_slice %20 {offsets = [0, 8], sizes = [8, 8], strides = [1, 1]} : vector<8x16xf32> to vector<8x8xf32>
    %65 = vector.extract_strided_slice %21 {offsets = [0, 8], sizes = [8, 8], strides = [1, 1]} : vector<8x16xf32> to vector<8x8xf32>
    %cst_29 = arith.constant dense<0.000000e+00> : vector<8x8xf32>
    %66 = tpu.matmul %63, %64, %cst_29 {dimension_numbers = #tpu.dot_dimension_numbers<[1], [1], [0], [0], [0, 0, 1, 0], [], []>} : vector<8x8xf32>, vector<8x8xf32>, vector<8x8xf32> -> vector<8x8xf32>
    %67 = arith.addf %66, %22 : vector<8x8xf32>
    %cst_30 = arith.constant dense<0xFF800000> : vector<8xf32>
    %68 = vector.multi_reduction <maximumf>, %67, %cst_30 [1] : vector<8x8xf32> to vector<8xf32>
    %69 = vector.shape_cast %68 : vector<8xf32> to vector<8x1xf32>
    %70 = vector.broadcast %69 : vector<8x1xf32> to vector<8x8xf32>
    %71 = arith.subf %67, %70 : vector<8x8xf32>
    %72 = math.exp %71 : vector<8x8xf32>
    %cst_31 = arith.constant dense<0.000000e+00> : vector<8xf32>
    %73 = vector.multi_reduction <add>, %72, %cst_31 [1] : vector<8x8xf32> to vector<8xf32>
    %74 = vector.shape_cast %73 : vector<8xf32> to vector<8x1xf32>
    %75 = tpu.reciprocal %74 {approx = true} : vector<8x1xf32> -> vector<8x1xf32>
    %76 = vector.broadcast %75 : vector<8x1xf32> to vector<8x8xf32>
    %77 = arith.mulf %72, %76 : vector<8x8xf32>
    %cst_32 = arith.constant dense<0.000000e+00> : vector<8x8xf32>
    %78 = tpu.matmul %77, %65, %cst_32 {dimension_numbers = #tpu.dot_dimension_numbers<[1], [0], [0], [1], [0, 0, 1, 1], [], []>} : vector<8x8xf32>, vector<8x8xf32>, vector<8x8xf32> -> vector<8x8xf32>
    %79 = vector.extract_strided_slice %23 {offsets = [16, 0], sizes = [8, 32], strides = [1, 1]} : vector<32x32xf32> to vector<8x32xf32>
    %cst_33 = arith.constant dense<0.000000e+00> : vector<8x32xf32>
    %80 = tpu.matmul %78, %79, %cst_33 {dimension_numbers = #tpu.dot_dimension_numbers<[1], [0], [0], [1], [0, 0, 1, 1], [], []>} : vector<8x8xf32>, vector<8x32xf32>, vector<8x32xf32> -> vector<8x32xf32>
    %81 = arith.addf %62, %80 : vector<8x32xf32>
    %82 = vector.extract_strided_slice %13 {offsets = [0, 24], sizes = [8, 8], strides = [1, 1]} : vector<8x32xf32> to vector<8x8xf32>
    %83 = vector.extract_strided_slice %20 {offsets = [0, 8], sizes = [8, 8], strides = [1, 1]} : vector<8x16xf32> to vector<8x8xf32>
    %84 = vector.extract_strided_slice %21 {offsets = [0, 8], sizes = [8, 8], strides = [1, 1]} : vector<8x16xf32> to vector<8x8xf32>
    %cst_34 = arith.constant dense<0.000000e+00> : vector<8x8xf32>
    %85 = tpu.matmul %82, %83, %cst_34 {dimension_numbers = #tpu.dot_dimension_numbers<[1], [1], [0], [0], [0, 0, 1, 0], [], []>} : vector<8x8xf32>, vector<8x8xf32>, vector<8x8xf32> -> vector<8x8xf32>
    %86 = arith.addf %85, %22 : vector<8x8xf32>
    %cst_35 = arith.constant dense<0xFF800000> : vector<8xf32>
    %87 = vector.multi_reduction <maximumf>, %86, %cst_35 [1] : vector<8x8xf32> to vector<8xf32>
    %88 = vector.shape_cast %87 : vector<8xf32> to vector<8x1xf32>
    %89 = vector.broadcast %88 : vector<8x1xf32> to vector<8x8xf32>
    %90 = arith.subf %86, %89 : vector<8x8xf32>
    %91 = math.exp %90 : vector<8x8xf32>
    %cst_36 = arith.constant dense<0.000000e+00> : vector<8xf32>
    %92 = vector.multi_reduction <add>, %91, %cst_36 [1] : vector<8x8xf32> to vector<8xf32>
    %93 = vector.shape_cast %92 : vector<8xf32> to vector<8x1xf32>
    %94 = tpu.reciprocal %93 {approx = true} : vector<8x1xf32> -> vector<8x1xf32>
    %95 = vector.broadcast %94 : vector<8x1xf32> to vector<8x8xf32>
    %96 = arith.mulf %91, %95 : vector<8x8xf32>
    %cst_37 = arith.constant dense<0.000000e+00> : vector<8x8xf32>
    %97 = tpu.matmul %96, %84, %cst_37 {dimension_numbers = #tpu.dot_dimension_numbers<[1], [0], [0], [1], [0, 0, 1, 1], [], []>} : vector<8x8xf32>, vector<8x8xf32>, vector<8x8xf32> -> vector<8x8xf32>
    %98 = vector.extract_strided_slice %23 {offsets = [24, 0], sizes = [8, 32], strides = [1, 1]} : vector<32x32xf32> to vector<8x32xf32>
    %cst_38 = arith.constant dense<0.000000e+00> : vector<8x32xf32>
    %99 = tpu.matmul %97, %98, %cst_38 {dimension_numbers = #tpu.dot_dimension_numbers<[1], [0], [0], [1], [0, 0, 1, 1], [], []>} : vector<8x8xf32>, vector<8x32xf32>, vector<8x32xf32> -> vector<8x32xf32>
    %100 = arith.addf %81, %99 : vector<8x32xf32>
    %c0_39 = arith.constant 0 : index
    %c0_40 = arith.constant 0 : index
    %101 = vector.load %arg10[%c0_39, %c0_40] : memref<1x32xf32, #tpu.memory_space<vmem>>, vector<1x32xf32>
    %102 = vector.broadcast %101 : vector<1x32xf32> to vector<8x32xf32>
    %103 = arith.addf %100, %102 : vector<8x32xf32>
    %c0_41 = arith.constant 0 : index
    %c0_42 = arith.constant 0 : index
    %c0_43 = arith.constant 0 : index
    %104 = vector.load %arg11[%c0_41, %c0_42, %c0_43] : memref<1x8x32xf32, #tpu.memory_space<vmem>>, vector<1x8x32xf32>
    %105 = vector.shape_cast %104 : vector<1x8x32xf32> to vector<8x32xf32>
    %106 = vector.shape_cast %103 : vector<8x32xf32> to vector<1x8x32xf32>
    tpu.vector_store %arg11[%c0_41, %c0_42, %c0_43], %106 {strides = array<i32>} : memref<1x8x32xf32, #tpu.memory_space<vmem>>, vector<1x8x32xf32>,
    return
  }
  func.func @transform_0(%arg0: i32) -> (i32, i32, i32) {
    %c0_i32 = arith.constant 0 : i32
    %c0_i32_0 = arith.constant 0 : i32
    %c0_i32_1 = arith.constant 0 : i32
    return %arg0, %c0_i32, %c0_i32_0 : i32, i32, i32
  }
  func.func @transform_1(%arg0: i32) -> (i32, i32) {
    %c0_i32 = arith.constant 0 : i32
    %c0_i32_0 = arith.constant 0 : i32
    %c0_i32_1 = arith.constant 0 : i32
    return %c0_i32, %c0_i32_0 : i32, i32
  }
  func.func @transform_2(%arg0: i32) -> (i32, i32) {
    %c0_i32 = arith.constant 0 : i32
    %c0_i32_0 = arith.constant 0 : i32
    %c0_i32_1 = arith.constant 0 : i32
    return %c0_i32, %c0_i32_0 : i32, i32
  }
  func.func @transform_3(%arg0: i32) -> (i32, i32) {
    %c0_i32 = arith.constant 0 : i32
    %c0_i32_0 = arith.constant 0 : i32
    %c0_i32_1 = arith.constant 0 : i32
    return %c0_i32, %c0_i32_0 : i32, i32
  }
  func.func @transform_4(%arg0: i32) -> (i32, i32) {
    %c0_i32 = arith.constant 0 : i32
    %c0_i32_0 = arith.constant 0 : i32
    %c0_i32_1 = arith.constant 0 : i32
    return %c0_i32, %c0_i32_0 : i32, i32
  }
  func.func @transform_5(%arg0: i32) -> (i32, i32) {
    %c0_i32 = arith.constant 0 : i32
    %c0_i32_0 = arith.constant 0 : i32
    %c0_i32_1 = arith.constant 0 : i32
    return %c0_i32, %c0_i32_0 : i32, i32
  }
  func.func @transform_6(%arg0: i32) -> (i32, i32) {
    %c0_i32 = arith.constant 0 : i32
    %c0_i32_0 = arith.constant 0 : i32
    %c0_i32_1 = arith.constant 0 : i32
    return %c0_i32, %c0_i32_0 : i32, i32
  }
  func.func @transform_7(%arg0: i32) -> (i32, i32) {
    %c0_i32 = arith.constant 0 : i32
    %c0_i32_0 = arith.constant 0 : i32
    %c0_i32_1 = arith.constant 0 : i32
    return %c0_i32, %c0_i32_0 : i32, i32
  }
  func.func @transform_8(%arg0: i32) -> (i32, i32) {
    %c0_i32 = arith.constant 0 : i32
    %c0_i32_0 = arith.constant 0 : i32
    %c0_i32_1 = arith.constant 0 : i32
    return %c0_i32, %c0_i32_0 : i32, i32
  }
  func.func @transform_9(%arg0: i32) -> (i32, i32) {
    %c0_i32 = arith.constant 0 : i32
    %c0_i32_0 = arith.constant 0 : i32
    %c0_i32_1 = arith.constant 0 : i32
    return %c0_i32, %c0_i32_0 : i32, i32
  }
  func.func @transform_10(%arg0: i32) -> (i32, i32, i32) {
    %c0_i32 = arith.constant 0 : i32
    %c0_i32_0 = arith.constant 0 : i32
    %c0_i32_1 = arith.constant 0 : i32
    return %arg0, %c0_i32, %c0_i32_0 : i32, i32, i32
  }
}

</mosaic_0001>

<bundles_post_ra>
// kernel: tpu_custom_call.1
= control target key start
LH: loop header
LB: loop body
LE: loop exit
PB: predicated region body
PF: predicated region fallthrough
CT: control target
= control target key end

     0   :  { %s2572_s0 = inlined_call_operand.hbm [shape: f32[2,8,32], index: 0, kind: input, shape index: {}]   ;;  %s2573_s1 = inlined_call_operand.hbm [shape: f32[32,112], index: 1, kind: input, shape index: {}]   ;;  %s2574_s2 = inlined_call_operand.vmem [shape: f32[1,112], index: 2, kind: input, shape index: {}]   ;;  %s2575_s3 = inlined_call_operand.vmem [shape: f32[8,32], index: 3, kind: input, shape index: {}]   ;;  %s2576_s4 = inlined_call_operand.hbm [shape: f32[8,32], index: 4, kind: input, shape index: {}]   ;;  %s2577_s5 = inlined_call_operand.vmem [shape: f32[8,16], index: 5, kind: input, shape index: {}]   ;;  %s2578_s6 = inlined_call_operand.hbm [shape: f32[8,16], index: 6, kind: input, shape index: {}]   ;;  %s2579_s7 = inlined_call_operand.vmem [shape: f32[8,8], index: 7, kind: input, shape index: {}]   ;;  %s2580_s8 = inlined_call_operand.hbm [shape: f32[32,32], index: 8, kind: input, shape index: {}]   ;;  %s2581_s9 = inlined_call_operand.vmem [shape: f32[1,32], index: 9, kind: input, shape index: {}]   ;;  %s2582_s10 = inlined_call_operand.hbm [shape: f32[2,8,32], index: 10, kind: output, shape index: {}]  }
   0x1   :  { %2587 = sst [smem:[#allocation16_spill]] %s2573_s1 }
   0x2   :  { %2588 = sst [smem:[#allocation17_spill]] %s2581_s9 }
   0x3   :  { %2589 = sst [smem:[#allocation18_spill]] %s2582_s10 }
   0x4   :  { %15 = vsyncpa [#allocation3], 0 }
   0x5   :  { %17 = vsyncpa [#allocation3 + $0x1], 0 }
   0x6   :  { %18 = vsyncpa [#allocation6], 0 }
   0x7   :  { %19 = vsyncpa [#allocation9], 0 }
   0x8   :  { %20 = vsyncpa [#allocation4], 0 }
   0x9   :  { %22 = vsyncpa [#allocation4 + $0x1], 0  ;;  %s2178_s13 = smov 0   ;;  %s2180_s14 = smov 0  }
   0xa   :  { %s2182_s15 = smov 0   ;;  %s2184_s16 = smov 0  }
   0xb LB: > { %s2103_s17 = smov [#allocation5]   ;;  %s2199_s19 = sadd.s32 4294967295, %s2101_s16   ;;  %s2101_s16 = sphi %s2184_s16, %s2613_s16   ;;  %s2097_s15 = sphi %s2182_s15, %s2612_s15   ;;  %s2093_s14 = sphi %s2180_s14, %s2611_s14   ;;  %s2089_s13 = sphi %s2178_s13, %s2610_s13  }
   0xc   : > { %s286_s18 = sshll.u32 %s2103_s17, 4  ;;  %p1624_p0 = scmp.ge.s32.totalorder %s2101_s16, 1  ;;  %s2204_s18 = int_to_ptr.vmem [resolvable:$true] %s286_s18 }
   0xd   : > { %p2584_p1 = scmp.eq.s32.totalorder %s2199_s19, 0  ;;  %p274_p2 = scmp.lt.s32.totalorder %s2101_s16, 3 }
   0xe   : > { %s2104_s21 = smov [#allocation8]   ;;  %s2105_s24 = smov [#allocation7]  }
   0xf   : > { %p2206_p3 = pnand %p1624_p0, %p274_p2  ;;  %s320_s22 = sshll.u32 %s2104_s21, 4  ;;  %s2219_s22 = int_to_ptr.vmem [resolvable:$true] %s320_s22 }
  0x10   : > { %s306_s25 = sshll.u32 %s2105_s24, 4  ;;  %s2592_s1 = sld [smem:[#allocation16_spill]]  ;;  %s2221_s25 = int_to_ptr.vmem [resolvable:$true] %s306_s25 }
  0x11   : > { %s2590_s20 = scalar_select %p2206_p3, 1, 0 }
  0x12   : > { %p1788_p5 = pneg %p2206_p3 }
  0x14   : > { %p2215_p6 = pnand %p1788_p5, %p2584_p1 }
  0x16   : > { %s1885_s28 = scalar_lea.hbm %s2592_s1, 512  ;;  %p2231_p8 = pneg %p2215_p6 }
  0x17   : > { %p1886_p7 = scmp.ne.s32.totalorder %s2592_s1, %s1885_s28  ;;  %p1892_p11 = scmp.lt.u32.totalorder %s1885_s28, %s2592_s1 }
  0x19   : > { %p1888_p9 = pnand %p2231_p8, %p1886_p7 }
  0x1b   : > { %p1889_p10 = pneg %p1888_p9 }
  0x1d   : > { %p1894_p12 = pnand %p1892_p11, %p1889_p10 }
  0x1f   : > { %1897 = shalt.err (!%p1894_p12)
}
  0x20   : > { %s1898_s21 = scalar_lea.vmem %s2204_s18, 512  ;;  %p1906_p5 = scmp.lt.s32.totalorder %s2204_s18, %s2204_s18 }
  0x21   : > { %p1899_p13 = scmp.ne.s32.totalorder %s2204_s18, %s1898_s21  ;;  %p1907_p4 = scmp.lt.s32.totalorder %s1898_s21, %s1898_s21 }
  0x23   : > { %p1901_p0 = pnand %p1899_p13, %p2231_p8  ;;  %p1908_p7 = por %p1907_p4, %p1906_p5 }
  0x25   : > { %p1902_p2 = pneg %p1901_p0 }
  0x27   : > { %p1909_p9 = pnand %p1908_p7, %p1902_p2 }
  0x29   : > { %1912 = shalt.err (!%p1909_p9)
}
  0x2a   : > { %s2106_s24 = smov 128   ;;  %s2107_s26 = smov 8  }
  0x2b   : > { %1791 = dma.hbm_to_vmem [thread:$0]  (!%p2215_p6), %s2592_s1, 512, %s2204_s18, [#allocation6], %s2106_s24, %s2106_s24, %s2107_s26  }
  0x2c   : > { %s1913_s12 = scalar_lea.hbm %s2578_s6, 128 }
  0x2d   : > { %p1914_p4 = scmp.ne.s32.totalorder %s2578_s6, %s1913_s12  ;;  %p1920_p12 = scmp.lt.u32.totalorder %s1913_s12, %s2578_s6 }
  0x2f   : > { %p1916_p10 = pnand %p1914_p4, %p2231_p8 }
  0x31   : > { %p1917_p11 = pneg %p1916_p10 }
  0x33   : > { %p1922_p13 = pnand %p1920_p12, %p1917_p11 }
  0x35   : > { %1925 = shalt.err (!%p1922_p13)
}
  0x36   : > { %s1926_s18 = scalar_lea.vmem %s2219_s22, 128  ;;  %p1934_p7 = scmp.lt.s32.totalorder %s2219_s22, %s2219_s22 }
  0x37   : > { %p1927_p0 = scmp.ne.s32.totalorder %s2219_s22, %s1926_s18  ;;  %p1935_p9 = scmp.lt.s32.totalorder %s1926_s18, %s1926_s18 }
  0x39   : > { %p1929_p2 = pnand %p1927_p0, %p2231_p8  ;;  %p1936_p4 = por %p1935_p9, %p1934_p7 }
  0x3b   : > { %p1930_p5 = pneg %p1929_p2 }
  0x3d   : > { %p1937_p10 = pnand %p1936_p4, %p1930_p5 }
  0x3f   : > { %1940 = shalt.err (!%p1937_p10)
}
  0x40   : > { %1797 = dma.hbm_to_vmem [thread:$0]  (!%p2215_p6), %s2578_s6, 128, %s2219_s22, [#allocation9]  }
  0x41   : > { %s1941_s29 = scalar_lea.hbm %s2576_s4, 128 }
  0x42   : > { %p1942_p11 = scmp.ne.s32.totalorder %s2576_s4, %s1941_s29  ;;  %p1948_p0 = scmp.lt.u32.totalorder %s1941_s29, %s2576_s4 }
  0x44   : > { %p1944_p12 = pnand %p1942_p11, %p2231_p8 }
  0x46   : > { %p1945_p13 = pneg %p1944_p12 }
  0x48   : > { %p1950_p2 = pnand %p1948_p0, %p1945_p13 }
  0x4a   : > { %1953 = shalt.err (!%p1950_p2)
}
  0x4b   : > { %s1954_s22 = scalar_lea.vmem %s2221_s25, 128  ;;  %p1962_p4 = scmp.lt.s32.totalorder %s2221_s25, %s2221_s25 }
  0x4c   : > { %p1955_p5 = scmp.ne.s32.totalorder %s2221_s25, %s1954_s22  ;;  %p1963_p10 = scmp.lt.s32.totalorder %s1954_s22, %s1954_s22 }
  0x4e   : > { %p1957_p7 = pnand %p1955_p5, %p2231_p8  ;;  %p1964_p11 = por %p1963_p10, %p1962_p4 }
  0x50   : > { %p1958_p9 = pneg %p1957_p7 }
  0x52   : > { %p1965_p12 = pnand %p1964_p11, %p1958_p9 }
  0x54   : > { %1968 = shalt.err (!%p1965_p12)
}
  0x55   : > { %1794 = dma.hbm_to_vmem [thread:$0]  (!%p2215_p6), %s2576_s4, 128, %s2221_s25, [#allocation6]  }
  0x56   : > { %s2108_s10 = smov [#allocation10]   ;;  %s1969_s30 = scalar_lea.hbm %s2580_s8, 512 }
  0x57   : > { %s333_s27 = sshll.u32 %s2108_s10, 4  ;;  %p1970_p13 = scmp.ne.s32.totalorder %s2580_s8, %s1969_s30  ;;  %s334_s27 = int_to_ptr.vmem [resolvable:$true] %s333_s27 }
  0x58   : > { %p1976_p5 = scmp.lt.u32.totalorder %s1969_s30, %s2580_s8 }
  0x59   : > { %p1972_p0 = pnand %p1970_p13, %p2231_p8 }
  0x5b   : > { %p1973_p2 = pneg %p1972_p0 }
  0x5d   : > { %p1978_p7 = pnand %p1976_p5, %p1973_p2 }
  0x5f   : > { %1981 = shalt.err (!%p1978_p7)
}
  0x60   : > { %s1982_s25 = scalar_lea.vmem %s334_s27, 512  ;;  %p1990_p11 = scmp.lt.s32.totalorder %s334_s27, %s334_s27 }
  0x61   : > { %p1983_p9 = scmp.ne.s32.totalorder %s334_s27, %s1982_s25  ;;  %p1991_p12 = scmp.lt.s32.totalorder %s1982_s25, %s1982_s25 }
  0x63   : > { %p1985_p4 = pnand %p1983_p9, %p2231_p8  ;;  %p1992_p1 = por %p1991_p12, %p1990_p11 }
  0x65   : > { %p1986_p10 = pneg %p1985_p4 }
  0x67   : > { %p1993_p3 = pnand %p1992_p1, %p1986_p10 }
  0x69   : > { %1996 = shalt.err (!%p1993_p3)
}
  0x6a   : > { %1800 = dma.hbm_to_vmem [thread:$0]  (!%p2215_p6), %s2580_s8, 512, %s334_s27, [#allocation9], %s2106_s24, %s2106_s24, %s2107_s26  }
  0x6b   : > { %s1623_s23 = sadd.s32 4294967294, %s2101_s16   ;;  %s2324_s11 = sadd.s32 1, %s2101_s16  }
  0x6c   : > { %s32_s10 = ssub.s32 %s2101_s16, %s2324_s11  ;;  %s35_s28 = sadd.s32 1, %s2097_s15 }
  0x6d   : > { %p33_p1 = scmp.eq.s32.totalorder %s32_s10, 0  ;;  %p42_p3 = scmp.ne.s32.totalorder %s2097_s15, %s2093_s14 }
  0x6e   : > { %p43_p8 = scmp.eq.s32.totalorder %s2101_s16, 0  ;;  %p48_p13 = scmp.ne.s32.totalorder %s2093_s14, %s2089_s13 }
  0x6f   : > { %s2335_s29 = scalar_select %p33_p1, %s2097_s15, %s35_s28  }
  0x70   : > { %p2337_p0 = por %p43_p8, %p42_p3  ;;  %p2595_p2 = scmp.eq.s32.totalorder %s2199_s19, 0 }
  0x71   : > { %p261_p5 = scmp.eq.s32.totalorder %s2199_s19, 1  ;;  %p267_p7 = scmp.eq.s32.totalorder %s1623_s23, 1 }
  0x72   : > { %p2343_p6 = por %p2595_p2, %p48_p13  ;;  %p1813_p9 = scmp.lt.s32.totalorder %s2101_s16, 2 }
  0x73   : > { %s350_s26 = sand.u32 1, %s2097_s15   ;;  %p2350_p4 = por %p261_p5, %p42_p3 }
  0x74   : > { %p2354_p10 = por %p267_p7, %p48_p13  ;;  %s1630_s17 = sshll.u32 %s350_s26, 3 }
  0x75   : > { %s2597_s27 = scalar_select %p2350_p4, 1, 0 }
  0x76   : > { %s2598_s12 = scalar_select %p2354_p10, 1, 0 }
  0x77   : > { %s1631_s21 = sshll.u32 %s2101_s16, 7  ;;  %s354_s9 = scalar_lea.vmem [#allocation2], %s1630_s17 }
  0x78   : > { %s2362_s18 = scalar_lea.hbm %s2572_s0, %s1631_s21  ;;  %s361_s23 = sshll.u32 %s354_s9, 4  ;;  %s2364_s23 = int_to_ptr.vmem [resolvable:$true] %s361_s23 }
  0x79   : > { %p2368_p11 = pnand %p1813_p9, %p2337_p0  ;;  %s351_s28 = scalar_lea.sflag [#allocation3], %s350_s26 }
  0x7a   : > { %s1997_s1 = scalar_lea.hbm %s2362_s18, 128  ;;  %s2002_s22 = scalar_lea.hbm %s2572_s0, 256 }
  0x7b   : > { %p1998_p12 = scmp.ne.s32.totalorder %s2362_s18, %s1997_s1  ;;  %p1999_p1 = pneg %p2368_p11 }
  0x7c   : > { %p2003_p13 = scmp.lt.u32.totalorder %s2362_s18, %s2572_s0  ;;  %p2004_p0 = scmp.lt.u32.totalorder %s2002_s22, %s1997_s1 }
  0x7d   : > { %p2000_p3 = pnand %p1999_p1, %p1998_p12  ;;  %p2006_p5 = scmp.lt.u32.totalorder %s1997_s1, %s2362_s18 }
  0x7e   : > { %p2005_p2 = por %p2004_p0, %p2003_p13 }
  0x7f   : > { %p2001_p8 = pneg %p2000_p3 }
  0x80   : > { %p2007_p7 = por %p2006_p5, %p2005_p2 }
  0x82   : > { %p2008_p9 = pnand %p2007_p7, %p2001_p8 }
  0x84   : > { %2011 = shalt.err (!%p2008_p9)
}
  0x85   : > { %s2012_s26 = scalar_lea.vmem %s2364_s23, 128  ;;  %s2109_s9 = smov [#allocation2]  }
  0x86   : > { %p2013_p12 = scmp.ne.s32.totalorder %s2364_s23, %s2012_s26  ;;  %s2017_s17 = sshll.u32 %s2109_s9, 4  ;;  %s2018_s17 = int_to_ptr.vmem [resolvable:$false] %s2017_s17 }
  0x87   : > { %s2019_s21 = scalar_lea.vmem %s2018_s17, 256  ;;  %p2020_p4 = scmp.lt.s32.totalorder %s2364_s23, %s2018_s17 }
  0x88   : > { %p2015_p3 = pnand %p2013_p12, %p1999_p1  ;;  %p2021_p13 = scmp.lt.s32.totalorder %s2019_s21, %s2012_s26 }
  0x8a   : > { %p2016_p10 = pneg %p2015_p3  ;;  %p2022_p0 = por %p2021_p13, %p2020_p4 }
  0x8c   : > { %p2023_p2 = pnand %p2022_p0, %p2016_p10 }
  0x8e   : > { %2026 = shalt.err (!%p2023_p2)
}
  0x8f   : > { %1804 = dma.hbm_to_vmem [thread:$0]  (!%p2368_p11), %s2362_s18, 128, %s2364_s23, %s351_s28  }
  0x90   : > { %p2600_p8 = scmp.ne.s32.totalorder %s2590_s20, 0 }
  0x91   : > { %s2400_s1 = sand.u32 (!%p2600_p8), 1, %s2093_s14  }
  0x92   : > { %370 = sbr.rel (%p2600_p8) target bundleno = 2871 (0xb37), region = 60  ;;  %s1633_s22 = sshll.u32 (!%p2600_p8), %s2400_s1, 3 }
  0x93   : > { %s373_s30 = scalar_lea.sflag (!%p2600_p8), [#allocation3], %s2400_s1  ;;  %s2406_s25 = scalar_lea.vmem (!%p2600_p8), [#allocation2], %s1633_s22 }
  0x99   : > { %2072 = dma.done.wait (%p2343_p6), %s373_s30, 128  }
  0x9a   : > { %2074 = vsyncadd (%p2343_p6), %s373_s30, 4294967168  ;;  %p2601_p4 = scmp.eq.s32.totalorder %s2199_s19, 0 }
  0x9c   : > { %2076 = dma.done.wait (%p2601_p4), [#allocation6], 640   ;;  %p2602_p10 = pmov %p2601_p4 }
  0x9d   : > { %p2603_p11 = pmov %p2601_p4 }
  0x9e   : > { %2078 = vsyncadd (%p2602_p10), [#allocation6], 4294966656 }
  0x9f   : > { %2080 = dma.done.wait (%p2603_p11), [#allocation9], 640   ;;  %p2604_p1 = pmov %p2601_p4 }
  0xa0   : > { %v2110_v0 = vmov 0.0|0.0   ;;  %vm2111_vm0 = vmmov 0   ;;  %v2112_v1 = vmov 0.0   ;;  %v430_v2 = vld [vmem:[#allocation5] sm:$0xff]  ;;  %v431_v3 = vld [vmem:[#allocation5 + $0x8] sm:$0xff]  ;;  %v432_v4 = vld [vmem:[#allocation5 + $0x10] sm:$0xff] }
  0xa1   : > { %2082 = vsyncadd (%p2604_p1), [#allocation9], 4294966656  ;;  %1762 = vmatprep.subr.bf16.mxu0 %v2110_v0  ;;  %1699 = vmatprep.mubr.msk.f32.mxu0 %vm2111_vm0, %v2112_v1  ;;  %v1763_v5 = vpack.c.bf16 %v431_v3, %v430_v2  ;;  %v433_v6 = vld [vmem:[#allocation5 + $0x18] sm:$0xff]  ;;  %v534_v7 = vld [vmem:[#allocation8] sm:$0xff]  ;;  %s2113_s20 = smov 96   ;;  %s2114_s23 = smov 32  }
  0xa2   : > { %1702 = vmatprep.subr.mxu1 %v2112_v1  ;;  %1704 = vmatprep.mubr.msk.f32.mxu1 %vm2111_vm0, %v2112_v1  ;;  %v528_v8 = vld [vmem:[%s2577_s5] sm:$0xff]  ;;  %v1766_v9 = vpack.c.bf16 %v433_v6, %v432_v4  ;;  %v517_v10 = vld [vmem:[#allocation7] sm:$0xff]  ;;  %s2115_s10 = smov 64   ;;  %vm441_vm1 = vcmask 261120   ;;  %s2116_s21 = smov 120   ;;  %vm553_vm2 = vcmask 64512  }
  0xa3   : > { %536 = vrot.lane.b32.xlu0 %v534_v7, %s2113_s20  ;;  %1764 = vmatpush3.bf16.msra.mxu0 %v1763_v5  ;;  %v429_v11 = vld [vmem:[%s2406_s25] sm:$0xff]  ;;  %s2118_s24 = smov 112   ;;  %s2119_s18 = smov 80  }
  0xa4   : > { %530 = vrot.lane.b32.xlu1 %v528_v8, %s2114_s23  ;;  %1765 = vmatprep.subr.bf16.mxu0 %v2110_v0  ;;  %v1639_v13 = vld [vmem:[%s2574_s2] ss:$0 sm:$0xff]  ;;  %v547_v49 = vld [vmem:[#allocation10 + $0x8] sm:$0xff]  ;;  %s2120_s23 = smov 72   ;;  %s2605_s9 = sld [smem:[#allocation17_spill]] }
  0xa5   : > { %v515_v21 = vld [vmem:[%s2575_s3] sm:$0xff]  ;;  %s1659_s17 = sshll.u32 %s2199_s19, 7  ;;  %p2607_p5 = scmp.ne.s32.totalorder %s2597_s27, 0 }
  0xa6   : > { %v2464_v30 = vld [vmem:[%s2579_s7] sm:$0xff] }
  0xa7   : > { %519 = vrot.lane.b32.xlu0 %v517_v10, %s2115_s10  ;;  %1767 = vmatpush3.bf16.msra.mxu0 %v1766_v9  ;;  %v546_v57 = vld [vmem:[#allocation10] sm:$0xff] }
  0xa8   : > { %1712 = vmatprep.subr.mxu0 %v2112_v1 }
  0xaa   : > { %1700 = vmatmul.mubr.msk.f32.vlgmr.msra.gmra.mrb[0].mxu0 %vm441_vm1, %v429_v11 }
  0xab   : > { %1714 = vmatprep.mubr.msk.f32.mxu0 %vm2111_vm0, %v2112_v1 }
 0x115   : > { %v537_v12 = vpop.permute.xlu0 %536 }
 0x116   : > { %v531_v20 = vpop.permute.xlu1 %530 }
 0x119   : > { %v520_v15 = vpop.permute.xlu0 %519 }
 0x17d   : > { %v511_v14 = vpop.f32.mrb[0].mxu0 }
 0x17e   : > { %v2437_v16 = vadd.f32 %v1639_v13, %v511_v14  ;;  %v1701_v17 = vpop.f32.mrb[1].mxu0 }
 0x17f   : > { %v548_v17 = vld [vmem:[#allocation10 + $0x10] sm:$0xff] }
 0x180   : > { %v522_v18 = vmul.f32 %v520_v15, %v2437_v16  ;;  %v539_v19 = vmul.f32 %v537_v12, %v2437_v16  ;;  %v533_v22 = vmul.f32 %v531_v20, %v2437_v16  ;;  %v516_v23 = vmul.f32 %v515_v21, %v2437_v16 }
 0x182   : > { %541 = vrot.lane.b32.xlu1 %v539_v19, %s2115_s10  ;;  %524 = vrot.lane.b32.xlu0 %v522_v18, %s2115_s10  ;;  %s2121_s10 = smov 104  }
 0x1f4   : > { %v542_v24 = vpop.permute.xlu1 %541  ;;  %v525_v25 = vpop.permute.xlu0 %524 }
 0x1f5   : > { %v544_v26 = vadd.f32 %v542_v24, %v533_v22  ;;  %v2446_v27 = vadd.f32 %v525_v25, %v516_v23 }
 0x1f7   : > { %551 = vrot.lane.b32.xlu1 %v544_v26, %s2113_s20  ;;  %717 = vrot.lane.b32.xlu0 %v2446_v27, %s2116_s21  ;;  %s2117_s20 = smov 88   ;;  %s428_s21 = scalar_lea.vmem [#allocation11], %s1633_s22 }
 0x1f8   : > { %s1515_s30 = sshll.u32 %s428_s21, 4  ;;  %s2122_s22 = smov [#allocation11]   ;;  %s2529_s30 = int_to_ptr.vmem [resolvable:$true] %s1515_s30 }
 0x1f9   : > { %s2027_s19 = scalar_lea.vmem %s2529_s30, 128 }
 0x1fa   : > { %p2028_p6 = scmp.ne.s32.totalorder %s2529_s30, %s2027_s19 }
 0x1fc   : > { %p2029_p7 = pnand %p2028_p6, %p2607_p5 }
 0x1fe   : > { %p2030_p9 = pneg %p2029_p7 }
 0x269   : > { %v552_v28 = vpop.permute.xlu1 %551  ;;  %v718_v29 = vpop.permute.xlu0 %717 }
 0x26a   : > { %1703 = vmatpush3.xpose.msk.msra.mxu1 %vm553_vm2, %v552_v28  ;;  %1713 = vmatpush3.xpose.msk.msra.mxu0 %vm553_vm2, %v552_v28 }
 0x26b   : > { %1707 = vmatprep.subr.mxu1 %v2112_v1  ;;  %1722 = vmatprep.subr.mxu0 %v2112_v1 }
 0x26d   : > { %1705 = vmatmul.mubr.msk.f32.vlgmr.msra.gmra.mrb[0].mxu1 %vm553_vm2, %v2446_v27  ;;  %1715 = vmatmul.mubr.msk.f32.vlgmr.msra.gmra.mrb[2].mxu0 %vm553_vm2, %v718_v29 }
 0x26e   : > { %1709 = vmatprep.mubr.msk.f32.mxu1 %vm2111_vm0, %v2112_v1  ;;  %1724 = vmatprep.mubr.msk.f32.mxu0 %vm2111_vm0, %v2112_v1 }
 0x26f   : > { %1723 = vmatpush3.msra.mxu0 %v547_v49 }
 0x270   : > { %1732 = vmatprep.subr.mxu0 %v2112_v1 }
 0x340   : > { %v625_v31 = vpop.f32.mrb[0].mxu1  ;;  %v787_v32 = vpop.f32.mrb[2].mxu0 }
 0x341   : > { %v626_v33 = vadd.f32 %v625_v31, %v2464_v30  ;;  %v788_v34 = vadd.f32 %v787_v32, %v2464_v30  ;;  %v1706_v35 = vpop.f32.mrb[1].mxu1  ;;  %v1716_v36 = vpop.f32.mrb[3].mxu0 }
 0x343   : > { %v629_v37 = vsel %vm553_vm2, %v626_v33, -inf  ;;  %v791_v38 = vsel %vm553_vm2, %v788_v34, -inf }
 0x344   : > { %630 = vmax.xlane.f32.xlu1 %v629_v37  ;;  %792 = vmax.xlane.f32.xlu0 %v791_v38 }
 0x3d1   : > { %v631_v39 = vpop.xlane.xlu1 %630  ;;  %v793_v40 = vpop.xlane.xlu0 %792 }
 0x3d2   : > { %v632_v41 = vsub.f32 %v626_v33, %v631_v39  ;;  %v794_v42 = vsub.f32 %v788_v34, %v793_v40  ;;  %v549_v33 = vld [vmem:[#allocation10 + $0x18] sm:$0xff] }
 0x3d4   : > { %v633_v43 = vmul.f32 1.442695, %v632_v41  ;;  %v795_v44 = vmul.f32 1.442695, %v794_v42  ;;  %v1657_v41 = vld [vmem:[%s2605_s9] ss:$0 sm:$0xff] }
 0x3d6   : > { %1869 = vpow2.f32 %v633_v43 }
 0x3d7   : > { %1871 = vpow2.f32 %v795_v44 }
 0x3e0   : > { %v1870_v45 = vpop.eup %1869 }
 0x3e1   : > { %v1872_v46 = vpop.eup %1871  ;;  %v635_v47 = vsel %vm553_vm2, %v1870_v45, 0.0 }
 0x3e2   : > { %636 = vadd.xlane.f32.xlu0 %v635_v47  ;;  %v797_v48 = vsel %vm553_vm2, %v1872_v46, 0.0 }
 0x3e3   : > { %798 = vadd.xlane.f32.xlu1 %v797_v48 }
 0x3f4   : > { %1023 = vrot.lane.b32.xlu1 %v544_v26, %s2117_s20 }
 0x3f8   : > { %1021 = vrot.lane.b32.xlu1 %v2446_v27, %s2118_s24  ;;  %641 = vrot.lane.b32.xlu0 %v2437_v16, %s2119_s18  ;;  %s2606_s24 = sld [smem:[#allocation18_spill]] }
 0x3fe   : > { %s2527_s18 = scalar_lea.hbm %s2606_s24, %s1659_s17 }
 0x46f   : > { %v637_v50 = vpop.xlane.xlu0 %636 }
 0x470   : > { %v799_v51 = vpop.xlane.xlu1 %798  ;;  %1873 = vrcp.f32 %v637_v50 }
 0x471   : > { %1875 = vrcp.f32 %v799_v51 }
 0x473   : > { %v642_v52 = vpop.permute.xlu0 %641 }
 0x474   : > { %1708 = vmatpush3.msra.mxu1 %v642_v52  ;;  %v1024_v60 = vpop.permute.xlu1 %1023 }
 0x475   : > { %1717 = vmatprep.subr.mxu1 %v2112_v1 }
 0x478   : > { %v1022_v63 = vpop.permute.xlu1 %1021 }
 0x47a   : > { %v1874_v53 = vpop.eup %1873 }
 0x47b   : > { %v639_v54 = vmul.f32 %v1874_v53, %v1870_v45  ;;  %v1876_v55 = vpop.eup %1875 }
 0x47c   : > { %v801_v56 = vmul.f32 %v1876_v55, %v1872_v46 }
 0x47d   : > { %1710 = vmatmul.mubr.msk.f32.vlgmr.msra.gmra.mrb[2].mxu1 %vm553_vm2, %v639_v54 }
 0x47e   : > { %1718 = vmatpush3.msra.mxu1 %v642_v52  ;;  %1719 = vmatprep.mubr.msk.f32.mxu1 %vm2111_vm0, %v2112_v1 }
 0x47f   : > { %1727 = vmatprep.subr.mxu1 %v2112_v1 }
 0x481   : > { %1720 = vmatmul.mubr.msk.f32.vlgmr.msra.gmra.mrb[4].mxu1 %vm553_vm2, %v801_v56 }
 0x482   : > { %1729 = vmatprep.mubr.msk.f32.mxu1 %vm2111_vm0, %v2112_v1  ;;  %1728 = vmatpush3.msra.mxu1 %v546_v57 }
 0x483   : > { %1737 = vmatprep.subr.mxu1 %v2112_v1 }
 0x550   : > { %v713_v58 = vpop.f32.mrb[2].mxu1 }
 0x551   : > { %v1711_v59 = vpop.f32.mrb[3].mxu1  ;;  %1730 = vmatmul.mubr.msk.f32.vlgmr.msra.gmra.mrb[6].mxu1 %vm553_vm2, %v713_v58 }
 0x552   : > { %1739 = vmatprep.mubr.msk.f32.mxu1 %vm2111_vm0, %v2112_v1 }
 0x554   : > { %v871_v61 = vpop.f32.mrb[4].mxu1 }
 0x555   : > { %v1721_v62 = vpop.f32.mrb[5].mxu1  ;;  %1725 = vmatmul.mubr.msk.f32.vlgmr.msra.gmra.mrb[4].mxu0 %vm553_vm2, %v871_v61 }
 0x556   : > { %1733 = vmatpush3.xpose.msk.msra.mxu0 %vm553_vm2, %v1024_v60  ;;  %1734 = vmatprep.mubr.msk.f32.mxu0 %vm2111_vm0, %v2112_v1 }
 0x557   : > { %1742 = vmatprep.subr.mxu0 %v2112_v1 }
 0x559   : > { %1735 = vmatmul.mubr.msk.f32.vlgmr.msra.gmra.mrb[6].mxu0 %vm553_vm2, %v1022_v63 }
 0x55a   : > { %1744 = vmatprep.mubr.msk.f32.mxu0 %vm2111_vm0, %v2112_v1  ;;  %1743 = vmatpush3.msra.mxu0 %v548_v17 }
 0x55b   : > { %1752 = vmatprep.subr.mxu0 %v2112_v1 }
 0x624   : > { %v1017_v0 = vpop.f32.mrb[6].mxu1 }
 0x625   : > { %v1731_v2 = vpop.f32.mrb[7].mxu1 }
 0x628   : > { %v944_v3 = vpop.f32.mrb[4].mxu0 }
 0x629   : > { %v1018_v4 = vadd.f32 %v1017_v0, %v944_v3  ;;  %v1726_v5 = vpop.f32.mrb[5].mxu0 }
 0x62c   : > { %v1095_v6 = vpop.f32.mrb[6].mxu0 }
 0x62d   : > { %v1096_v7 = vadd.f32 %v1095_v6, %v2464_v30  ;;  %v1736_v8 = vpop.f32.mrb[7].mxu0 }
 0x62f   : > { %v1099_v9 = vsel %vm553_vm2, %v1096_v7, -inf }
 0x630   : > { %1100 = vmax.xlane.f32.xlu0 %v1099_v9 }
 0x646   : > { %1110 = vrot.lane.b32.xlu0 %v2437_v16, %s2120_s23  ;;  %s1502_s23 = scalar_lea.sflag [#allocation4], %s2400_s1 }
 0x6bd   : > { %v1101_v10 = vpop.xlane.xlu0 %1100 }
 0x6be   : > { %v1102_v11 = vsub.f32 %v1096_v7, %v1101_v10 }
 0x6c0   : > { %v1103_v12 = vmul.f32 1.442695, %v1102_v11 }
 0x6c1   : > { %v1111_v13 = vpop.permute.xlu0 %1110 }
 0x6c2   : > { %1877 = vpow2.f32 %v1103_v12  ;;  %1738 = vmatpush3.msra.mxu1 %v1111_v13 }
 0x6c3   : > { %1747 = vmatprep.subr.mxu1 %v2112_v1 }
 0x6cc   : > { %v1878_v14 = vpop.eup %1877 }
 0x6cd   : > { %v1105_v15 = vsel %vm553_vm2, %v1878_v14, 0.0 }
 0x6ce   : > { %1106 = vadd.xlane.f32.xlu1 %v1105_v15 }
 0x6df   : > { %1260 = vrot.lane.b32.xlu1 %v2446_v27, %s2121_s10  ;;  %s2031_s10 = sshll.u32 %s2122_s22, 4  ;;  %s2032_s10 = int_to_ptr.vmem [resolvable:$false] %s2031_s10 }
 0x6e0   : > { %s2033_s28 = scalar_lea.vmem %s2032_s10, 256  ;;  %p2034_p12 = scmp.lt.s32.totalorder %s2529_s30, %s2032_s10 }
 0x6e1   : > { %p2035_p3 = scmp.lt.s32.totalorder %s2033_s28, %s2027_s19 }
 0x6e3   : > { %p2036_p13 = por %p2035_p3, %p2034_p12 }
 0x6e5   : > { %p2037_p0 = pnand %p2036_p13, %p2030_p9 }
 0x75b   : > { %v1107_v16 = vpop.xlane.xlu1 %1106 }
 0x75c   : > { %1879 = vrcp.f32 %v1107_v16 }
 0x75f   : > { %v1261_v20 = vpop.permute.xlu1 %1260 }
 0x766   : > { %v1880_v18 = vpop.eup %1879 }
 0x767   : > { %v1109_v19 = vmul.f32 %v1880_v18, %v1878_v14 }
 0x769   : > { %1740 = vmatmul.mubr.msk.f32.vlgmr.msra.gmra.mrb[8].mxu1 %vm553_vm2, %v1109_v19 }
 0x76a   : > { %1748 = vmatpush3.xpose.msk.msra.mxu1 %vm553_vm2, %v1024_v60  ;;  %1749 = vmatprep.mubr.msk.f32.mxu1 %vm2111_vm0, %v2112_v1 }
 0x76b   : > { %1757 = vmatprep.subr.mxu1 %v2112_v1 }
 0x76d   : > { %1750 = vmatmul.mubr.msk.f32.vlgmr.msra.gmra.mrb[10].mxu1 %vm553_vm2, %v1261_v20 }
 0x76e   : > { %1759 = vmatprep.mubr.msk.f32.mxu1 %vm2111_vm0, %v2112_v1  ;;  %1758 = vmatpush3.msra.mxu1 %v549_v33 }
 0x83c   : > { %v1182_v21 = vpop.f32.mrb[8].mxu1 }
 0x83d   : > { %v1741_v22 = vpop.f32.mrb[9].mxu1  ;;  %1745 = vmatmul.mubr.msk.f32.vlgmr.msra.gmra.mrb[8].mxu0 %vm553_vm2, %v1182_v21 }
 0x83e   : > { %1753 = vmatpush3.msra.mxu0 %v1111_v13  ;;  %1754 = vmatprep.mubr.msk.f32.mxu0 %vm2111_vm0, %v2112_v1 }
 0x840   : > { %v1330_v23 = vpop.f32.mrb[10].mxu1 }
 0x841   : > { %v1331_v24 = vadd.f32 %v1330_v23, %v2464_v30  ;;  %v1751_v25 = vpop.f32.mrb[11].mxu1 }
 0x843   : > { %v1334_v26 = vsel %vm553_vm2, %v1331_v24, -inf }
 0x844   : > { %1335 = vmax.xlane.f32.xlu0 %v1334_v26 }
 0x8d1   : > { %v1336_v27 = vpop.xlane.xlu0 %1335 }
 0x8d2   : > { %v1337_v28 = vsub.f32 %v1331_v24, %v1336_v27 }
 0x8d4   : > { %v1338_v29 = vmul.f32 1.442695, %v1337_v28 }
 0x8d6   : > { %1881 = vpow2.f32 %v1338_v29 }
 0x8e0   : > { %v1882_v31 = vpop.eup %1881 }
 0x8e1   : > { %v1340_v32 = vsel %vm553_vm2, %v1882_v31, 0.0 }
 0x8e2   : > { %1341 = vadd.xlane.f32.xlu1 %v1340_v32 }
 0x910   : > { %v1255_v1 = vpop.f32.mrb[8].mxu0 }
 0x911   : > { %v1259_v34 = vadd.f32 %v1255_v1, %v1018_v4  ;;  %v1746_v35 = vpop.f32.mrb[9].mxu0 }
 0x96f   : > { %v1342_v30 = vpop.xlane.xlu1 %1341 }
 0x970   : > { %1883 = vrcp.f32 %v1342_v30 }
 0x97a   : > { %v1884_v36 = vpop.eup %1883 }
 0x97b   : > { %v1344_v37 = vmul.f32 %v1884_v36, %v1882_v31 }
 0x97d   : > { %1755 = vmatmul.mubr.msk.f32.vlgmr.msra.gmra.mrb[10].mxu0 %vm553_vm2, %v1344_v37 }
 0xa50   : > { %v1414_v38 = vpop.f32.mrb[10].mxu0 }
 0xa51   : > { %v1756_v39 = vpop.f32.mrb[11].mxu0  ;;  %1760 = vmatmul.mubr.msk.f32.vlgmr.msra.gmra.mrb[12].mxu1 %vm553_vm2, %v1414_v38 }
 0xb24   : > { %v1487_v40 = vpop.f32.mrb[12].mxu1 }
 0xb25   : > { %v1491_v42 = vadd.f32 %v1487_v40, %v1259_v34  ;;  %v1761_v43 = vpop.f32.mrb[13].mxu1 }
 0xb27   : > { %v1499_v44 = vadd.f32 %v1657_v41, %v1491_v42 }
 0xb29   : > { %1500 = vst.msk [vmem:[%s428_s21] sm:$0xff] %vm441_vm1, %v1499_v44 }
 0xb2a   : > { %2040 = shalt.err (!%p2037_p0)
}
 0xb2b   : > { %s2041_s1 = scalar_lea.hbm %s2527_s18, 128  ;;  %s2045_s17 = scalar_lea.hbm %s2606_s24, 256 }
 0xb2c   : > { %p2042_p2 = scmp.ne.s32.totalorder %s2527_s18, %s2041_s1  ;;  %p2046_p10 = scmp.lt.u32.totalorder %s2527_s18, %s2606_s24 }
 0xb2d   : > { %p2047_p11 = scmp.lt.u32.totalorder %s2045_s17, %s2041_s1  ;;  %p2049_p6 = scmp.lt.u32.totalorder %s2041_s1, %s2527_s18 }
 0xb2e   : > { %p2043_p8 = pnand %p2042_p2, %p2607_p5 }
 0xb2f   : > { %p2048_p1 = por %p2047_p11, %p2046_p10 }
 0xb30   : > { %p2044_p4 = pneg %p2043_p8 }
 0xb31   : > { %p2050_p7 = por %p2049_p6, %p2048_p1 }
 0xb33   : > { %p2051_p9 = pnand %p2050_p7, %p2044_p4 }
 0xb35   : > { %2054 = shalt.err (!%p2051_p9)
}
 0xb36   : > { %1786 = dma.vmem_to_hbm [thread:$0]  (%p2607_p5), %s2529_s30, 128, %s2527_s18, %s1502_s23  }
 0xb37 PF: > { %s1527_s20 = sand.u32 1, %s2089_s13   ;;  %p2608_p12 = scmp.ne.s32.totalorder %s2598_s12, 0 }
 0xb38   : > { %p2609_p3 = scmp.ge.s32.totalorder %s2101_s16, 2  ;;  %s1528_s19 = scalar_lea.sflag [#allocation4], %s1527_s20 }
 0xb3a   : > { %p1806_p13 = pnand %p2609_p3, %p2608_p12 }
 0xb3c   : > { %2084 = dma.done.wait (!%p1806_p13), %s1528_s19, 128  }
 0xb3d   : > { %2086 = vsyncadd (!%p1806_p13), %s1528_s19, 4294967168  ;;  %p25_p0 = scmp.ge.s32.totalorder %s2324_s11, 4   ;;  %s2610_s13 = smov %s2093_s14 }
 0xb3e   : > { %s2611_s14 = smov %s2097_s15  ;;  %s2612_s15 = smov %s2335_s29 }
 0xb3f   : > { %s2613_s16 = smov %s2324_s11  ;;  %27 = sbr.rel (!%p25_p0) target bundleno = 11 (0xb), region = 121 }
 0xb46   :  { %1533 = vsyncpa [#allocation3], 1 }
 0xb47   :  { %1535 = vsyncpa [#allocation3 + $0x1], 1 }
 0xb48   :  { %1536 = vsyncpa [#allocation6], 1 }
 0xb49   :  { %1537 = vsyncpa [#allocation9], 1 }
 0xb4a   :  { %1538 = vsyncpa [#allocation4], 1 }
 0xb4b   :  { %1540 = vsyncpa [#allocation4 + $0x1], 1 }

</bundles_post_ra>
